<compile_context>
chip_gen: v7x
topology: tpu7x:2x2x1
jax: 0.10.0
libtpu: 0.0.40
codegen_flags: <defaults>
</compile_context>

<pallas_src>
import jax
import jax.numpy as jnp
from jax import lax
from jax.experimental import pallas as pl
from jax.experimental.pallas import tpu as pltpu


def _round_up(n, m):
    return ((n + m - 1) // m) * m


def _vmem_limit_bytes():
    """Scoped-VMEM limit derived from the actual chip (v7x: 64 MiB physical)."""
    try:
        cap = int(pltpu.get_tpu_info().vmem_capacity_bytes)
    except Exception:
        cap = 64 * 1024 * 1024                 # conservative (v7x) fallback
    return min((cap * 3) // 4, 100 * 1024 * 1024)


def _num_tensorcores():
    """Best-effort TensorCores per device (2 on v7x); falls back to 1."""
    try:
        dev = jax.devices()[0]
        for attr in ("num_cores", "core_count"):
            n = getattr(dev, attr, None)
            if isinstance(n, int) and n >= 1:
                return n
    except Exception:
        pass
    return 1


def _pick_time_block(T, bt, four_hp, hp, gates_esize, budget, cap=32):
    """Largest tt (multiple of 8, <= cap) whose recurrence working set fits
    the VMEM budget: 2 gates_x buffers + single-buffered W_hh + h/c state."""
    fixed = (hp * four_hp * gates_esize        # W_hh^T (single buffer)
             + 3 * bt * hp * 4                 # h_n out (+1 spare) + c scratch
             + 4 * bt * 4)                     # lengths
    per_step = 2 * bt * four_hp * gates_esize  # double-buffered gates_x slab
    avail = max(budget - fixed, per_step * 8)
    tt = max(8, min(avail // per_step, cap, _round_up(T, 8)))
    return int(tt) // 8 * 8


# ---------------------------------------------------------------------------
# Kernel 1: parallel input projection  gates_x = x @ W_ih^T + bias
# ---------------------------------------------------------------------------
def _input_proj_kernel(x_ref, w_ref, b_ref, gx_ref):
    acc = jnp.dot(x_ref[...], w_ref[...], preferred_element_type=jnp.float32)
    gx_ref[...] = (acc + b_ref[...]).astype(gx_ref.dtype)


def _input_projection(x2d, w_t, bias, out_dtype, vmem_limit,
                      *, row_tile=512, col_tile=512):
    """x2d: (TB, I) -> (TB, 4Hp).  TB is a multiple of 16; 4Hp of 512."""
    TB, I = x2d.shape
    N = w_t.shape[1]                            # 4*Hp (multiple of 512)
    rt = min(TB, row_tile)
    ct = N if N <= col_tile else col_tile       # ct | N since N % 512 == 0
    tb_pad = _round_up(TB, rt)
    if tb_pad != TB:
        x2d = jnp.pad(x2d, ((0, tb_pad - TB), (0, 0)))
    nr, nc = tb_pad // rt, N // ct

    if nc == 1:
        # Constant block index -> keep a single VMEM buffer for the weights.
        w_spec = pl.BlockSpec((I, ct), lambda r, c: (0, c),
                              pipeline_mode=pl.Buffered(1))
    else:
        w_spec = pl.BlockSpec((I, ct), lambda r, c: (0, c))

    gx = pl.pallas_call(
        _input_proj_kernel,
        out_shape=jax.ShapeDtypeStruct((tb_pad, N), out_dtype),
        grid_spec=pltpu.PrefetchScalarGridSpec(
            num_scalar_prefetch=0,
            grid=(nr, nc),
            in_specs=[
                pl.BlockSpec((rt, I), lambda r, c: (r, 0)),     # x rows
                w_spec,                                          # W_ih^T cols
                pl.BlockSpec((1, ct), lambda r, c: (0, c)),      # fused bias
            ],
            out_specs=pl.BlockSpec((rt, ct), lambda r, c: (r, c)),
        ),
        compiler_params=pltpu.CompilerParams(
            dimension_semantics=("parallel", "parallel"),
            vmem_limit_bytes=vmem_limit),
    )(x2d, w_t, bias)
    return gx[:TB]


# ---------------------------------------------------------------------------
# Kernel 2: sequential recurrence over blocked timesteps
# ---------------------------------------------------------------------------
def _make_recurrent_kernel(tt, bt, hp):
    def kernel(tmax_ref, len_ref, gx_ref, whh_ref, h_ref, c_ref):
        b_blk = pl.program_id(0)
        t_blk = pl.program_id(1)

        @pl.when(t_blk == 0)
        def _init():
            h_ref[...] = jnp.zeros_like(h_ref)
            c_ref[...] = jnp.zeros_like(c_ref)

        t0 = t_blk * tt

        # Skip time blocks entirely past every length in this batch tile.
        @pl.when(t0 < tmax_ref[b_blk])
        def _body():
            # Hoisted (bt,1)->(bt,Hp) broadcast: done once per block, not per
            # unrolled step (JAX does not CSE broadcast_in_dim).
            len_b = jnp.broadcast_to(len_ref[...], (bt, hp))

            def step(s, carry):
                h, c = carry
                gates = gx_ref[s].astype(jnp.float32) + jnp.dot(
                    h.astype(whh_ref.dtype), whh_ref[...],
                    preferred_element_type=jnp.float32)
                # Hp is a multiple of 128 -> each slice is lane-aligned.
                i_g = jax.nn.sigmoid(gates[:, 0 * hp:1 * hp])
                f_g = jax.nn.sigmoid(gates[:, 1 * hp:2 * hp])
                g_g = jnp.tanh(gates[:, 2 * hp:3 * hp])
                o_g = jax.nn.sigmoid(gates[:, 3 * hp:4 * hp])
                c_new = f_g * c + i_g * g_g
                h_new = o_g * jnp.tanh(c_new)
                # Packed-sequence semantics: only advance while t < length[b].
                valid = (t0 + s) < len_b
                return jnp.where(valid, h_new, h), jnp.where(valid, c_new, c)

            # Modest unroll: full only for short blocks, else 4 (vreg pressure).
            h, c = lax.fori_loop(0, tt, step, (h_ref[...], c_ref[...]),
                                 unroll=(True if tt <= 8 else 4))
            h_ref[...] = h
            c_ref[...] = c

    return kernel


# ---------------------------------------------------------------------------
# Wrapper
# ---------------------------------------------------------------------------
def lstm_forward(x, lengths, params, *,
                 time_block=32, batch_block=None, mxu_bf16=True):
    """x: (B, T, I) f32 (batch-first, as the PyTorch module receives it);
    lengths: (B,) int; returns (B,) f32 == squeeze(Linear(h_n))."""
    B, T, I = x.shape
    H = params["w_hh"].shape[1]
    Hp = _round_up(H, 128)                     # lane-aligned gate slices
    four_hp = 4 * Hp
    compute_dtype = jnp.bfloat16 if mxu_bf16 else jnp.float32
    gates_dtype = compute_dtype
    esize = jnp.dtype(gates_dtype).itemsize
    vmem_limit = _vmem_limit_bytes()

    # --- parameters: pad hidden dim to Hp.  Zero-padded rows/cols + zero bias
    # keep the padded state identically 0 for all timesteps. ---
    def pad_gate_rows(w):                       # (4H, X) -> (4, Hp, X)
        return jnp.pad(w.reshape(4, H, -1), ((0, 0), (0, Hp - H), (0, 0)))

    w_ih_t = jnp.transpose(pad_gate_rows(params["w_ih"]),
                           (2, 0, 1)).reshape(I, four_hp)            # (I, 4Hp)
    w_hh_p = jnp.pad(pad_gate_rows(params["w_hh"]),
                     ((0, 0), (0, 0), (0, Hp - H)))                   # (4,Hp,Hp)
    w_hh_t = jnp.transpose(w_hh_p, (2, 0, 1)).reshape(Hp, four_hp)    # (Hp,4Hp)
    bias = jnp.pad((params["b_ih"] + params["b_hh"]).reshape(4, H),
                   ((0, 0), (0, Hp - H))).reshape(1, four_hp)

    # --- tiling (batch rounded to 16 so bf16 blocks stay sublane-aligned) ---
    if batch_block is None:
        n_cores = _num_tensorcores()
        if n_cores > 1 and B >= 16:            # split batch across v7x's 2 TCs
            bt = _round_up(-(-B // n_cores), 16)
        else:                                  # single tile on v5e/v6e
            bt = _round_up(B, 16)
    else:
        bt = _round_up(min(batch_block, B), 16)
    B_pad = _round_up(B, bt)

    tt = _pick_time_block(T, bt, four_hp, Hp, esize,
                          budget=(vmem_limit * 3) // 5, cap=time_block)
    t_pad = _round_up(T, tt)

    # lengths: clamp to T (padded timesteps never advance the state); padded
    # batch rows get length 0 -> stay at init (finite gates) and are sliced off.
    len_pad = jnp.pad(jnp.clip(lengths.astype(jnp.int32), 0, T),
                      (0, B_pad - B))
    lengths2d = len_pad.reshape(B_pad, 1)
    tile_max = len_pad.reshape(B_pad // bt, bt).max(axis=1)  # per-tile max len

    # --- 1) parallel input projection (off the sequential critical path) ---
    x_tbi = jnp.transpose(x, (1, 0, 2))                      # (T, B, I)
    x_tbi = jnp.pad(x_tbi, ((0, t_pad - T), (0, B_pad - B), (0, 0)))
    x2d = x_tbi.reshape(t_pad * B_pad, I).astype(compute_dtype)
    gx = _input_projection(x2d, w_ih_t.astype(compute_dtype), bias,
                           gates_dtype, vmem_limit)
    gx = gx.reshape(t_pad, B_pad, four_hp)

    # --- 2) sequential recurrence ---
    def gx_index_map(b, t, tmax_ref):
        # Clamp past-the-end time blocks to the last useful block: the block
        # index stops changing, so Pallas skips the (useless) gates_x DMA.
        last = jnp.maximum((tmax_ref[b] + tt - 1) // tt - 1, 0)
        return (jnp.minimum(t, last), b, 0)

    h_n = pl.pallas_call(
        _make_recurrent_kernel(tt, bt, Hp),
        out_shape=jax.ShapeDtypeStruct((B_pad, Hp), jnp.float32),
        grid_spec=pltpu.PrefetchScalarGridSpec(
            num_scalar_prefetch=1,                           # tile_max -> SMEM
            grid=(B_pad // bt, t_pad // tt),
            in_specs=[
                pl.BlockSpec((bt, 1), lambda b, t, tmax: (b, 0)),   # lengths
                pl.BlockSpec((tt, bt, four_hp), gx_index_map),      # gates_x
                pl.BlockSpec((Hp, four_hp), lambda b, t, tmax: (0, 0),
                             pipeline_mode=pl.Buffered(1)),         # W_hh^T
            ],
            out_specs=pl.BlockSpec((bt, Hp), lambda b, t, tmax: (b, 0)),
            scratch_shapes=[pltpu.VMEM((bt, Hp), jnp.float32)],     # c state
        ),
        compiler_params=pltpu.CompilerParams(
            dimension_semantics=("parallel", "arbitrary"),
            vmem_limit_bytes=vmem_limit),
    )(tile_max, lengths2d, gx, w_hh_t.astype(compute_dtype))

    # --- 3) tiny (H -> 1) FC head in plain XLA (keeps kernel output lane-dense)
    out = jnp.dot(h_n[:B, :H], params["w_fc"].T,
                  precision=lax.Precision.HIGHEST) + params["b_fc"]
    return out[:, 0]


# ---------------------------------------------------------------------------
# Parameter init (mirrors the module) and a pure-JAX f32 reference
# ---------------------------------------------------------------------------
def init_params(key, input_size, hidden_size):
    """xavier_uniform for W_ih, orthogonal for W_hh, zero biases; small
    uniform for the fc head (as nn.Linear default)."""
    k1, k2, k3 = jax.random.split(key, 3)
    bound = (6.0 / (input_size + 4 * hidden_size)) ** 0.5
    w_ih = jax.random.uniform(k1, (4 * hidden_size, input_size),
                              jnp.float32, -bound, bound)
    w_hh = jax.nn.initializers.orthogonal()(
        k2, (4 * hidden_size, hidden_size), jnp.float32)
    b_ih = jnp.zeros((4 * hidden_size,), jnp.float32)
    b_hh = jnp.zeros((4 * hidden_size,), jnp.float32)
    fc_bound = 1.0 / (hidden_size ** 0.5)
    w_fc = jax.random.uniform(k3, (1, hidden_size), jnp.float32,
                              -fc_bound, fc_bound)
    b_fc = jnp.zeros((1,), jnp.float32)
    return {"w_ih": w_ih, "w_hh": w_hh, "b_ih": b_ih, "b_hh": b_hh,
            "w_fc": w_fc, "b_fc": b_fc}


def lstm_reference(x, lengths, params):
    """Strict-f32 reference (packed-sequence semantics) for validation."""
    B, T, I = x.shape
    H = params["w_hh"].shape[1]
    hi = lax.Precision.HIGHEST
    w_ih_t, w_hh_t = params["w_ih"].T, params["w_hh"].T
    bias = params["b_ih"] + params["b_hh"]
    lens = jnp.clip(lengths.astype(jnp.int32), 0, T)

    def step(carry, inp):
        h, c = carry
        x_t, t = inp
        g = (jnp.dot(x_t, w_ih_t, precision=hi)
             + jnp.dot(h, w_hh_t, precision=hi) + bias)
        i_g = jax.nn.sigmoid(g[:, 0 * H:1 * H])
        f_g = jax.nn.sigmoid(g[:, 1 * H:2 * H])
        g_g = jnp.tanh(g[:, 2 * H:3 * H])
        o_g = jax.nn.sigmoid(g[:, 3 * H:4 * H])
        c_new = f_g * c + i_g * g_g
        h_new = o_g * jnp.tanh(c_new)
        valid = (t < lens)[:, None]
        return (jnp.where(valid, h_new, h), jnp.where(valid, c_new, c)), None

    h0 = jnp.zeros((B, H), jnp.float32)
    c0 = jnp.zeros((B, H), jnp.float32)
    (h_n, _), _ = lax.scan(step, (h0, c0),
                           (jnp.transpose(x, (1, 0, 2)), jnp.arange(T)))
    out = jnp.dot(h_n, params["w_fc"].T, precision=hi) + params["b_fc"]
    return out[:, 0]


if __name__ == "__main__":
    input_size, hidden_size = 16, 32
    B, T = 2, 8

    key = jax.random.PRNGKey(0)
    kx, kp = jax.random.split(key)
    params = init_params(kp, input_size, hidden_size)

    # Batch-first input, as the PyTorch module receives it.
    x = jax.random.normal(kx, (B, T, input_size), jnp.float32)
    lengths = jnp.array([8, 5], dtype=jnp.int32)     # sorted descending

    ref = lstm_reference(x, lengths, params)

    # Strict-f32 flag: must track the f32 reference tightly.
    out_f32 = lstm_forward(x, lengths, params, mxu_bf16=False)
    jax.block_until_ready(out_f32)
    assert out_f32.shape == (B,)
    assert jnp.allclose(out_f32, ref, rtol=2e-3, atol=2e-3), (out_f32, ref)

    # Default bf16-MXU path (perf): loose tolerance vs the f32 reference.
    out = lstm_forward(x, lengths, params)
    jax.block_until_ready(out)
    assert out.shape == (B,)
    assert jnp.allclose(out, ref, rtol=5e-2, atol=5e-2), (out, ref)

    print("KERNEL_OK")
</pallas_src>

<mosaic_0001>
module attributes {stable_mosaic.version = 11 : i64} {
  func.func @_input_proj_kernel(%arg0: i32, %arg1: i32, %arg2: memref<128x16xf32, #tpu.memory_space<vmem>>, %arg3: memref<16x512xf32, #tpu.memory_space<vmem>>, %arg4: memref<1x512xf32, #tpu.memory_space<vmem>>, %arg5: memref<128x512xf32, #tpu.memory_space<vmem>>) attributes {dimension_semantics = [#tpu.dimension_semantics<parallel>, #tpu.dimension_semantics<parallel>], iteration_bounds = array<i64: 1, 1>, scalar_prefetch = 0 : i64, scratch_operands = 0 : i64, tpu.core_type = #tpu.core_type<tc>, window_params = [{transform_indices = @transform_0, window_bounds = array<i64: 128, 16>}, {pipeline_mode = #tpu.pipeline_mode<synchronous>, transform_indices = @transform_1, window_bounds = array<i64: 16, 512>}, {transform_indices = @transform_2, window_bounds = array<i64: 1, 512>}, {transform_indices = @transform_3, window_bounds = array<i64: 128, 512>}]} {
    %c0 = arith.constant 0 : index
    %c0_0 = arith.constant 0 : index
    %0 = vector.load %arg2[%c0, %c0_0] : memref<128x16xf32, #tpu.memory_space<vmem>>, vector<128x16xf32>
    %c0_1 = arith.constant 0 : index
    %c0_2 = arith.constant 0 : index
    %1 = vector.load %arg3[%c0_1, %c0_2] : memref<16x512xf32, #tpu.memory_space<vmem>>, vector<16x512xf32>
    %cst = arith.constant dense<0.000000e+00> : vector<128x512xf32>
    %2 = tpu.matmul %0, %1, %cst {dimension_numbers = #tpu.dot_dimension_numbers<[1], [0], [0], [1], [0, 0, 1, 1], [], []>} : vector<128x16xf32>, vector<16x512xf32>, vector<128x512xf32> -> vector<128x512xf32>
    %c0_3 = arith.constant 0 : index
    %c0_4 = arith.constant 0 : index
    %3 = vector.load %arg4[%c0_3, %c0_4] : memref<1x512xf32, #tpu.memory_space<vmem>>, vector<1x512xf32>
    %4 = vector.broadcast %3 : vector<1x512xf32> to vector<128x512xf32>
    %5 = arith.addf %2, %4 : vector<128x512xf32>
    %c0_5 = arith.constant 0 : index
    %c0_6 = arith.constant 0 : index
    %6 = vector.load %arg5[%c0_5, %c0_6] : memref<128x512xf32, #tpu.memory_space<vmem>>, vector<128x512xf32>
    tpu.vector_store %arg5[%c0_5, %c0_6], %5 {strides = array<i32>} : memref<128x512xf32, #tpu.memory_space<vmem>>, vector<128x512xf32>,
    return
  }
  func.func @transform_0(%arg0: i32, %arg1: i32) -> (i32, i32) {
    %c0_i32 = arith.constant 0 : i32
    %c0_i32_0 = arith.constant 0 : i32
    return %arg0, %c0_i32 : i32, i32
  }
  func.func @transform_1(%arg0: i32, %arg1: i32) -> (i32, i32) {
    %c0_i32 = arith.constant 0 : i32
    %c0_i32_0 = arith.constant 0 : i32
    return %c0_i32, %arg1 : i32, i32
  }
  func.func @transform_2(%arg0: i32, %arg1: i32) -> (i32, i32) {
    %c0_i32 = arith.constant 0 : i32
    %c0_i32_0 = arith.constant 0 : i32
    return %c0_i32, %arg1 : i32, i32
  }
  func.func @transform_3(%arg0: i32, %arg1: i32) -> (i32, i32) {
    %c0_i32 = arith.constant 0 : i32
    return %arg0, %arg1 : i32, i32
  }
}

</mosaic_0001>

<bundles_post_ra>
// kernel: tpu_custom_call.1
= control target key start
LH: loop header
LB: loop body
LE: loop exit
PB: predicated region body
PF: predicated region fallthrough
CT: control target
= control target key end

     0   :  { %v580_v7 = vmov 0.0   ;;  %vm61_vm0 = vcmask 130048   ;;  %s827_s0 = inlined_call_operand.vmem [shape: f32[128,16], index: 0, kind: input, shape index: {}]   ;;  %s828_s1 = inlined_call_operand.vmem [shape: f32[16,512], index: 1, kind: input, shape index: {}]   ;;  %s829_s2 = inlined_call_operand.vmem [shape: f32[1,512], index: 2, kind: input, shape index: {}]   ;;  %s830_s3 = inlined_call_operand.hbm [shape: f32[128,512], index: 3, kind: output, shape index: {}]  }
   0x1   :  { %v32_v0 = vld [vmem:[%s828_s1 + $0x8] sm:$0xff]  ;;  %v34_v2 = vld [vmem:[%s828_s1 + $0x18] sm:$0xff]  ;;  %v31_v5 = vld [vmem:[%s828_s1] sm:$0xff]  ;;  %174 = vmatprep.mubr.f32.mxu0 %v580_v7  ;;  %335 = vmatprep.mubr.f32.mxu1 %v580_v7 }
   0x2   :  { %v36_v1 = vld [vmem:[%s828_s1 + $0x28] sm:$0xff]  ;;  %v38_v4 = vld [vmem:[%s828_s1 + $0x38] sm:$0xff]  ;;  %v35_v6 = vld [vmem:[%s828_s1 + $0x20] sm:$0xff] }
   0x3   :  { %v544_v3 = vpack.c.bf16 %v36_v1, %v32_v0  ;;  %v548_v8 = vpack.c.bf16 %v38_v4, %v34_v2  ;;  %v546_v9 = vpack.c.bf16 %v35_v6, %v31_v5  ;;  %v33_v10 = vld [vmem:[%s828_s1 + $0x10] sm:$0xff]  ;;  %v15_v13 = vld [vmem:[%s827_s0] sm:$0xff]  ;;  %v16_v14 = vld [vmem:[%s827_s0 + $0x8] sm:$0xff] }
   0x4   :  { %v37_v11 = vld [vmem:[%s828_s1 + $0x30] sm:$0xff] }
   0x5   :  { %545 = vmatprep.subr.bf16.mxu0 %v544_v3  ;;  %v550_v12 = vpack.c.bf16 %v37_v11, %v33_v10  ;;  %549 = vmatprep.subr.bf16.mxu1 %v548_v8 }
   0x6   :  { %547 = vmatpush1.bf16.msra.mxu0 %v546_v9 }
   0x7   :  { %551 = vmatpush1.bf16.msra.mxu1 %v550_v12 }
   0x9   :  { %512 = vmatmul.mubr.msk.f32.vlgmr.msra.gmra.mrb[0].mxu0 %vm61_vm0, %v15_v13 }
   0xa   :  { %528 = vmatmul.mubr.msk.f32.vlgmr.msra.gmra.mrb[0].mxu1 %vm61_vm0, %v15_v13  ;;  %180 = vmatprep.mubr.f32.mxu0 %v580_v7 }
   0xb   :  { %8 = vsyncpa [#allocation3], 0  ;;  %341 = vmatprep.mubr.f32.mxu1 %v580_v7  ;;  %v17_v15 = vld [vmem:[%s827_s0 + $0x10] sm:$0xff]  ;;  %v18_v16 = vld [vmem:[%s827_s0 + $0x18] sm:$0xff]  ;;  %v41_v29 = vlaneseq }
   0xc   :  { %v19_v17 = vld [vmem:[%s827_s0 + $0x20] sm:$0xff]  ;;  %v20_v18 = vld [vmem:[%s827_s0 + $0x28] sm:$0xff]  ;;  %v21_v19 = vld [vmem:[%s827_s0 + $0x30] sm:$0xff] }
   0xd   :  { %513 = vmatmul.mubr.msk.f32.gmra.mrb[2].mxu0 %vm61_vm0, %v16_v14  ;;  %v22_v20 = vld [vmem:[%s827_s0 + $0x38] sm:$0xff]  ;;  %v23_v21 = vld [vmem:[%s827_s0 + $0x40] sm:$0xff]  ;;  %v24_v22 = vld [vmem:[%s827_s0 + $0x48] sm:$0xff]  ;;  %v42_v30 = vshrl.u32 %v41_v29, 7 }
   0xe   :  { %529 = vmatmul.mubr.msk.f32.gmra.mrb[2].mxu1 %vm61_vm0, %v16_v14  ;;  %186 = vmatprep.mubr.f32.mxu0 %v580_v7  ;;  %v25_v23 = vld [vmem:[%s827_s0 + $0x50] sm:$0xff]  ;;  %v26_v24 = vld [vmem:[%s827_s0 + $0x58] sm:$0xff]  ;;  %v27_v25 = vld [vmem:[%s827_s0 + $0x60] sm:$0xff] }
   0xf   :  { %347 = vmatprep.mubr.f32.mxu1 %v580_v7  ;;  %v28_v26 = vld [vmem:[%s827_s0 + $0x68] sm:$0xff]  ;;  %v29_v27 = vld [vmem:[%s827_s0 + $0x70] sm:$0xff]  ;;  %v30_v28 = vld [vmem:[%s827_s0 + $0x78] sm:$0xff]  ;;  %v43_v31 = vsub.s32 0, %v42_v30  ;;  %v51_v33 = vsub.s32 2, %v42_v30  ;;  %v47_v34 = vsub.s32 1, %v42_v30 }
  0x10   :  { %v39_v32 = vld [vmem:[%s829_s2] sm:$0xf]  ;;  %v55_v35 = vsub.s32 3, %v42_v30  ;;  %s581_s0 = smov [#allocation2]  }
  0x11   :  { %514 = vmatmul.mubr.msk.f32.gmra.mrb[4].mxu0 %vm61_vm0, %v17_v15  ;;  %v743_v36 = vrot.slane %v39_v32, %v43_v31  ;;  %v745_v37 = vrot.slane %v39_v32, %v51_v33  ;;  %v747_v38 = vrot.slane %v39_v32, %v47_v34  ;;  %s501_s2 = sshll.u32 %s581_s0, 4  ;;  %s502_s2 = int_to_ptr.vmem [resolvable:$true] %s501_s2 }
  0x12   :  { %530 = vmatmul.mubr.msk.f32.gmra.mrb[4].mxu1 %vm61_vm0, %v17_v15  ;;  %192 = vmatprep.mubr.f32.mxu0 %v580_v7  ;;  %v749_v39 = vrot.slane %v39_v32, %v55_v35  ;;  %s556_s6 = scalar_lea.vmem %s502_s2, 8192  ;;  %p561_p1 = scmp.lt.s32.totalorder %s502_s2, %s502_s2 }
  0x13   :  { %353 = vmatprep.mubr.f32.mxu1 %v580_v7  ;;  %p557_p0 = scmp.ne.s32.totalorder %s502_s2, %s556_s6  ;;  %p562_p2 = scmp.lt.s32.totalorder %s556_s6, %s556_s6 }
  0x15   :  { %515 = vmatmul.mubr.msk.f32.gmra.mrb[6].mxu0 %vm61_vm0, %v18_v16  ;;  %p563_p3 = por %p562_p2, %p561_p1 }
  0x16   :  { %531 = vmatmul.mubr.msk.f32.gmra.mrb[6].mxu1 %vm61_vm0, %v18_v16  ;;  %198 = vmatprep.mubr.f32.mxu0 %v580_v7 }
  0x17   :  { %359 = vmatprep.mubr.f32.mxu1 %v580_v7  ;;  %p564_p4 = pnand %p563_p3, %p557_p0 }
  0x19   :  { %516 = vmatmul.mubr.msk.f32.gmra.mrb[8].mxu0 %vm61_vm0, %v19_v17 }
  0x1a   :  { %532 = vmatmul.mubr.msk.f32.gmra.mrb[8].mxu1 %vm61_vm0, %v19_v17  ;;  %204 = vmatprep.mubr.f32.mxu0 %v580_v7 }
  0x1b   :  { %365 = vmatprep.mubr.f32.mxu1 %v580_v7 }
  0x1d   :  { %517 = vmatmul.mubr.msk.f32.gmra.mrb[10].mxu0 %vm61_vm0, %v20_v18 }
  0x1e   :  { %533 = vmatmul.mubr.msk.f32.gmra.mrb[10].mxu1 %vm61_vm0, %v20_v18  ;;  %210 = vmatprep.mubr.f32.mxu0 %v580_v7 }
  0x1f   :  { %371 = vmatprep.mubr.f32.mxu1 %v580_v7 }
  0x21   :  { %518 = vmatmul.mubr.msk.f32.gmra.mrb[12].mxu0 %vm61_vm0, %v21_v19 }
  0x22   :  { %534 = vmatmul.mubr.msk.f32.gmra.mrb[12].mxu1 %vm61_vm0, %v21_v19  ;;  %216 = vmatprep.mubr.f32.mxu0 %v580_v7 }
  0x23   :  { %377 = vmatprep.mubr.f32.mxu1 %v580_v7 }
  0x25   :  { %519 = vmatmul.mubr.msk.f32.gmra.mrb[14].mxu0 %vm61_vm0, %v22_v20 }
  0x26   :  { %535 = vmatmul.mubr.msk.f32.gmra.mrb[14].mxu1 %vm61_vm0, %v22_v20  ;;  %222 = vmatprep.mubr.f32.mxu0 %v580_v7 }
  0x27   :  { %383 = vmatprep.mubr.f32.mxu1 %v580_v7 }
  0x29   :  { %520 = vmatmul.mubr.msk.f32.gmra.mrb[16].mxu0 %vm61_vm0, %v23_v21 }
  0x2a   :  { %536 = vmatmul.mubr.msk.f32.gmra.mrb[16].mxu1 %vm61_vm0, %v23_v21  ;;  %228 = vmatprep.mubr.f32.mxu0 %v580_v7 }
  0x2b   :  { %389 = vmatprep.mubr.f32.mxu1 %v580_v7 }
  0x2d   :  { %521 = vmatmul.mubr.msk.f32.gmra.mrb[18].mxu0 %vm61_vm0, %v24_v22 }
  0x2e   :  { %537 = vmatmul.mubr.msk.f32.gmra.mrb[18].mxu1 %vm61_vm0, %v24_v22  ;;  %234 = vmatprep.mubr.f32.mxu0 %v580_v7 }
  0x2f   :  { %395 = vmatprep.mubr.f32.mxu1 %v580_v7 }
  0x31   :  { %522 = vmatmul.mubr.msk.f32.gmra.mrb[20].mxu0 %vm61_vm0, %v25_v23 }
  0x32   :  { %538 = vmatmul.mubr.msk.f32.gmra.mrb[20].mxu1 %vm61_vm0, %v25_v23  ;;  %240 = vmatprep.mubr.f32.mxu0 %v580_v7 }
  0x33   :  { %401 = vmatprep.mubr.f32.mxu1 %v580_v7 }
  0x35   :  { %523 = vmatmul.mubr.msk.f32.gmra.mrb[22].mxu0 %vm61_vm0, %v26_v24 }
  0x36   :  { %539 = vmatmul.mubr.msk.f32.gmra.mrb[22].mxu1 %vm61_vm0, %v26_v24  ;;  %246 = vmatprep.mubr.f32.mxu0 %v580_v7 }
  0x37   :  { %407 = vmatprep.mubr.f32.mxu1 %v580_v7 }
  0x39   :  { %524 = vmatmul.mubr.msk.f32.gmra.mrb[24].mxu0 %vm61_vm0, %v27_v25 }
  0x3a   :  { %540 = vmatmul.mubr.msk.f32.gmra.mrb[24].mxu1 %vm61_vm0, %v27_v25  ;;  %252 = vmatprep.mubr.f32.mxu0 %v580_v7 }
  0x3b   :  { %413 = vmatprep.mubr.f32.mxu1 %v580_v7 }
  0x3d   :  { %525 = vmatmul.mubr.msk.f32.gmra.mrb[26].mxu0 %vm61_vm0, %v28_v26 }
  0x3e   :  { %541 = vmatmul.mubr.msk.f32.gmra.mrb[26].mxu1 %vm61_vm0, %v28_v26  ;;  %258 = vmatprep.mubr.f32.mxu0 %v580_v7 }
  0x3f   :  { %419 = vmatprep.mubr.f32.mxu1 %v580_v7 }
  0x41   :  { %526 = vmatmul.mubr.msk.f32.gmra.mrb[28].mxu0 %vm61_vm0, %v29_v27 }
  0x42   :  { %542 = vmatmul.mubr.msk.f32.gmra.mrb[28].mxu1 %vm61_vm0, %v29_v27  ;;  %264 = vmatprep.mubr.f32.mxu0 %v580_v7 }
  0x43   :  { %425 = vmatprep.mubr.f32.mxu1 %v580_v7 }
  0x45   :  { %527 = vmatmul.mubr.msk.f32.gmra.mrb[30].mxu0 %vm61_vm0, %v30_v28 }
  0x46   :  { %543 = vmatmul.mubr.msk.f32.gmra.mrb[30].mxu1 %vm61_vm0, %v30_v28 }
  0xdc   :  { %v176_v40 = vpop.f32.mrb[0].mxu0 }
  0xdd   :  { %v177_v41 = vadd.f32 %v176_v40, %v743_v36  ;;  %v337_v42 = vpop.f32.mrb[0].mxu1  ;;  %v178_v43 = vpop.f32.mrb[1].mxu0 }
  0xde   :  { %v338_v44 = vadd.f32 %v337_v42, %v745_v37  ;;  %v179_v45 = vadd.f32 %v178_v43, %v747_v38  ;;  %v339_v46 = vpop.f32.mrb[1].mxu1 }
  0xdf   :  { %432 = vst [vmem:[#allocation2] sm:$0xff] %v177_v41  ;;  %v340_v47 = vadd.f32 %v339_v46, %v749_v39 }
  0xe0   :  { %434 = vst [vmem:[#allocation2 + $0x10] sm:$0xff] %v338_v44  ;;  %433 = vst [vmem:[#allocation2 + $0x8] sm:$0xff] %v179_v45  ;;  %v182_v48 = vpop.f32.mrb[2].mxu0 }
  0xe1   :  { %435 = vst [vmem:[#allocation2 + $0x18] sm:$0xff] %v340_v47  ;;  %v183_v49 = vadd.f32 %v182_v48, %v743_v36  ;;  %v343_v50 = vpop.f32.mrb[2].mxu1  ;;  %v184_v51 = vpop.f32.mrb[3].mxu0 }
  0xe2   :  { %v344_v52 = vadd.f32 %v343_v50, %v745_v37  ;;  %v185_v53 = vadd.f32 %v184_v51, %v747_v38  ;;  %v345_v54 = vpop.f32.mrb[3].mxu1 }
  0xe3   :  { %436 = vst [vmem:[#allocation2 + $0x20] sm:$0xff] %v183_v49  ;;  %v346_v55 = vadd.f32 %v345_v54, %v749_v39 }
  0xe4   :  { %438 = vst [vmem:[#allocation2 + $0x30] sm:$0xff] %v344_v52  ;;  %437 = vst [vmem:[#allocation2 + $0x28] sm:$0xff] %v185_v53  ;;  %v188_v56 = vpop.f32.mrb[4].mxu0 }
  0xe5   :  { %439 = vst [vmem:[#allocation2 + $0x38] sm:$0xff] %v346_v55  ;;  %v189_v57 = vadd.f32 %v188_v56, %v743_v36  ;;  %v349_v58 = vpop.f32.mrb[4].mxu1  ;;  %v190_v59 = vpop.f32.mrb[5].mxu0 }
  0xe6   :  { %v350_v60 = vadd.f32 %v349_v58, %v745_v37  ;;  %v191_v61 = vadd.f32 %v190_v59, %v747_v38  ;;  %v351_v62 = vpop.f32.mrb[5].mxu1 }
  0xe7   :  { %440 = vst [vmem:[#allocation2 + $0x40] sm:$0xff] %v189_v57  ;;  %v352_v63 = vadd.f32 %v351_v62, %v749_v39 }
  0xe8   :  { %442 = vst [vmem:[#allocation2 + $0x50] sm:$0xff] %v350_v60  ;;  %441 = vst [vmem:[#allocation2 + $0x48] sm:$0xff] %v191_v61  ;;  %v194_v0 = vpop.f32.mrb[6].mxu0 }
  0xe9   :  { %443 = vst [vmem:[#allocation2 + $0x58] sm:$0xff] %v352_v63  ;;  %v195_v1 = vadd.f32 %v194_v0, %v743_v36  ;;  %v355_v2 = vpop.f32.mrb[6].mxu1  ;;  %v196_v3 = vpop.f32.mrb[7].mxu0 }
  0xea   :  { %v356_v4 = vadd.f32 %v355_v2, %v745_v37  ;;  %v197_v5 = vadd.f32 %v196_v3, %v747_v38  ;;  %v357_v6 = vpop.f32.mrb[7].mxu1 }
  0xeb   :  { %444 = vst [vmem:[#allocation2 + $0x60] sm:$0xff] %v195_v1  ;;  %v358_v7 = vadd.f32 %v357_v6, %v749_v39 }
  0xec   :  { %446 = vst [vmem:[#allocation2 + $0x70] sm:$0xff] %v356_v4  ;;  %445 = vst [vmem:[#allocation2 + $0x68] sm:$0xff] %v197_v5  ;;  %v200_v8 = vpop.f32.mrb[8].mxu0 }
  0xed   :  { %447 = vst [vmem:[#allocation2 + $0x78] sm:$0xff] %v358_v7  ;;  %v201_v9 = vadd.f32 %v200_v8, %v743_v36  ;;  %v361_v10 = vpop.f32.mrb[8].mxu1  ;;  %v202_v11 = vpop.f32.mrb[9].mxu0 }
  0xee   :  { %v362_v12 = vadd.f32 %v361_v10, %v745_v37  ;;  %v203_v13 = vadd.f32 %v202_v11, %v747_v38  ;;  %v363_v14 = vpop.f32.mrb[9].mxu1 }
  0xef   :  { %448 = vst [vmem:[#allocation2 + $0x80] sm:$0xff] %v201_v9  ;;  %v364_v15 = vadd.f32 %v363_v14, %v749_v39 }
  0xf0   :  { %450 = vst [vmem:[#allocation2 + $0x90] sm:$0xff] %v362_v12  ;;  %449 = vst [vmem:[#allocation2 + $0x88] sm:$0xff] %v203_v13  ;;  %v206_v16 = vpop.f32.mrb[10].mxu0 }
  0xf1   :  { %451 = vst [vmem:[#allocation2 + $0x98] sm:$0xff] %v364_v15  ;;  %v207_v17 = vadd.f32 %v206_v16, %v743_v36  ;;  %v367_v18 = vpop.f32.mrb[10].mxu1  ;;  %v208_v19 = vpop.f32.mrb[11].mxu0 }
  0xf2   :  { %v368_v20 = vadd.f32 %v367_v18, %v745_v37  ;;  %v209_v21 = vadd.f32 %v208_v19, %v747_v38  ;;  %v369_v22 = vpop.f32.mrb[11].mxu1 }
  0xf3   :  { %452 = vst [vmem:[#allocation2 + $0xa0] sm:$0xff] %v207_v17  ;;  %v370_v23 = vadd.f32 %v369_v22, %v749_v39 }
  0xf4   :  { %454 = vst [vmem:[#allocation2 + $0xb0] sm:$0xff] %v368_v20  ;;  %453 = vst [vmem:[#allocation2 + $0xa8] sm:$0xff] %v209_v21  ;;  %v212_v24 = vpop.f32.mrb[12].mxu0 }
  0xf5   :  { %455 = vst [vmem:[#allocation2 + $0xb8] sm:$0xff] %v370_v23  ;;  %v213_v25 = vadd.f32 %v212_v24, %v743_v36  ;;  %v373_v26 = vpop.f32.mrb[12].mxu1  ;;  %v214_v27 = vpop.f32.mrb[13].mxu0 }
  0xf6   :  { %v374_v28 = vadd.f32 %v373_v26, %v745_v37  ;;  %v215_v29 = vadd.f32 %v214_v27, %v747_v38  ;;  %v375_v30 = vpop.f32.mrb[13].mxu1 }
  0xf7   :  { %456 = vst [vmem:[#allocation2 + $0xc0] sm:$0xff] %v213_v25  ;;  %v376_v31 = vadd.f32 %v375_v30, %v749_v39 }
  0xf8   :  { %458 = vst [vmem:[#allocation2 + $0xd0] sm:$0xff] %v374_v28  ;;  %457 = vst [vmem:[#allocation2 + $0xc8] sm:$0xff] %v215_v29  ;;  %v218_v32 = vpop.f32.mrb[14].mxu0 }
  0xf9   :  { %459 = vst [vmem:[#allocation2 + $0xd8] sm:$0xff] %v376_v31  ;;  %v219_v33 = vadd.f32 %v218_v32, %v743_v36  ;;  %v379_v34 = vpop.f32.mrb[14].mxu1  ;;  %v220_v35 = vpop.f32.mrb[15].mxu0 }
  0xfa   :  { %v380_v40 = vadd.f32 %v379_v34, %v745_v37  ;;  %v221_v41 = vadd.f32 %v220_v35, %v747_v38  ;;  %v381_v42 = vpop.f32.mrb[15].mxu1 }
  0xfb   :  { %460 = vst [vmem:[#allocation2 + $0xe0] sm:$0xff] %v219_v33  ;;  %v382_v43 = vadd.f32 %v381_v42, %v749_v39 }
  0xfc   :  { %462 = vst [vmem:[#allocation2 + $0xf0] sm:$0xff] %v380_v40  ;;  %461 = vst [vmem:[#allocation2 + $0xe8] sm:$0xff] %v221_v41  ;;  %v224_v44 = vpop.f32.mrb[16].mxu0 }
  0xfd   :  { %463 = vst [vmem:[#allocation2 + $0xf8] sm:$0xff] %v382_v43  ;;  %v225_v45 = vadd.f32 %v224_v44, %v743_v36  ;;  %v385_v46 = vpop.f32.mrb[16].mxu1  ;;  %v226_v47 = vpop.f32.mrb[17].mxu0 }
  0xfe   :  { %v386_v48 = vadd.f32 %v385_v46, %v745_v37  ;;  %v227_v49 = vadd.f32 %v226_v47, %v747_v38  ;;  %v387_v50 = vpop.f32.mrb[17].mxu1 }
  0xff   :  { %464 = vst [vmem:[#allocation2 + $0x100] sm:$0xff] %v225_v45  ;;  %v388_v51 = vadd.f32 %v387_v50, %v749_v39 }
 0x100   :  { %466 = vst [vmem:[#allocation2 + $0x110] sm:$0xff] %v386_v48  ;;  %465 = vst [vmem:[#allocation2 + $0x108] sm:$0xff] %v227_v49  ;;  %v230_v52 = vpop.f32.mrb[18].mxu0 }
 0x101   :  { %467 = vst [vmem:[#allocation2 + $0x118] sm:$0xff] %v388_v51  ;;  %v231_v53 = vadd.f32 %v230_v52, %v743_v36  ;;  %v391_v54 = vpop.f32.mrb[18].mxu1  ;;  %v232_v55 = vpop.f32.mrb[19].mxu0 }
 0x102   :  { %v392_v56 = vadd.f32 %v391_v54, %v745_v37  ;;  %v233_v57 = vadd.f32 %v232_v55, %v747_v38  ;;  %v393_v58 = vpop.f32.mrb[19].mxu1 }
 0x103   :  { %468 = vst [vmem:[#allocation2 + $0x120] sm:$0xff] %v231_v53  ;;  %v394_v59 = vadd.f32 %v393_v58, %v749_v39 }
 0x104   :  { %470 = vst [vmem:[#allocation2 + $0x130] sm:$0xff] %v392_v56  ;;  %469 = vst [vmem:[#allocation2 + $0x128] sm:$0xff] %v233_v57  ;;  %v236_v60 = vpop.f32.mrb[20].mxu0 }
 0x105   :  { %471 = vst [vmem:[#allocation2 + $0x138] sm:$0xff] %v394_v59  ;;  %v237_v61 = vadd.f32 %v236_v60, %v743_v36  ;;  %v397_v62 = vpop.f32.mrb[20].mxu1  ;;  %v238_v63 = vpop.f32.mrb[21].mxu0 }
 0x106   :  { %v398_v0 = vadd.f32 %v397_v62, %v745_v37  ;;  %v239_v1 = vadd.f32 %v238_v63, %v747_v38  ;;  %v399_v2 = vpop.f32.mrb[21].mxu1 }
 0x107   :  { %472 = vst [vmem:[#allocation2 + $0x140] sm:$0xff] %v237_v61  ;;  %v400_v3 = vadd.f32 %v399_v2, %v749_v39 }
 0x108   :  { %474 = vst [vmem:[#allocation2 + $0x150] sm:$0xff] %v398_v0  ;;  %473 = vst [vmem:[#allocation2 + $0x148] sm:$0xff] %v239_v1  ;;  %v242_v4 = vpop.f32.mrb[22].mxu0 }
 0x109   :  { %475 = vst [vmem:[#allocation2 + $0x158] sm:$0xff] %v400_v3  ;;  %v243_v5 = vadd.f32 %v242_v4, %v743_v36  ;;  %v403_v6 = vpop.f32.mrb[22].mxu1  ;;  %v244_v7 = vpop.f32.mrb[23].mxu0 }
 0x10a   :  { %v404_v8 = vadd.f32 %v403_v6, %v745_v37  ;;  %v245_v9 = vadd.f32 %v244_v7, %v747_v38  ;;  %v405_v10 = vpop.f32.mrb[23].mxu1 }
 0x10b   :  { %476 = vst [vmem:[#allocation2 + $0x160] sm:$0xff] %v243_v5  ;;  %v406_v11 = vadd.f32 %v405_v10, %v749_v39 }
 0x10c   :  { %478 = vst [vmem:[#allocation2 + $0x170] sm:$0xff] %v404_v8  ;;  %477 = vst [vmem:[#allocation2 + $0x168] sm:$0xff] %v245_v9  ;;  %v248_v12 = vpop.f32.mrb[24].mxu0 }
 0x10d   :  { %479 = vst [vmem:[#allocation2 + $0x178] sm:$0xff] %v406_v11  ;;  %v249_v13 = vadd.f32 %v248_v12, %v743_v36  ;;  %v409_v14 = vpop.f32.mrb[24].mxu1  ;;  %v250_v15 = vpop.f32.mrb[25].mxu0 }
 0x10e   :  { %v410_v16 = vadd.f32 %v409_v14, %v745_v37  ;;  %v251_v17 = vadd.f32 %v250_v15, %v747_v38  ;;  %v411_v18 = vpop.f32.mrb[25].mxu1 }
 0x10f   :  { %480 = vst [vmem:[#allocation2 + $0x180] sm:$0xff] %v249_v13  ;;  %v412_v19 = vadd.f32 %v411_v18, %v749_v39 }
 0x110   :  { %482 = vst [vmem:[#allocation2 + $0x190] sm:$0xff] %v410_v16  ;;  %481 = vst [vmem:[#allocation2 + $0x188] sm:$0xff] %v251_v17  ;;  %v254_v20 = vpop.f32.mrb[26].mxu0 }
 0x111   :  { %483 = vst [vmem:[#allocation2 + $0x198] sm:$0xff] %v412_v19  ;;  %v255_v21 = vadd.f32 %v254_v20, %v743_v36  ;;  %v415_v22 = vpop.f32.mrb[26].mxu1  ;;  %v256_v23 = vpop.f32.mrb[27].mxu0 }
 0x112   :  { %v416_v24 = vadd.f32 %v415_v22, %v745_v37  ;;  %v257_v25 = vadd.f32 %v256_v23, %v747_v38  ;;  %v417_v26 = vpop.f32.mrb[27].mxu1 }
 0x113   :  { %484 = vst [vmem:[#allocation2 + $0x1a0] sm:$0xff] %v255_v21  ;;  %v418_v27 = vadd.f32 %v417_v26, %v749_v39 }
 0x114   :  { %486 = vst [vmem:[#allocation2 + $0x1b0] sm:$0xff] %v416_v24  ;;  %485 = vst [vmem:[#allocation2 + $0x1a8] sm:$0xff] %v257_v25  ;;  %v260_v28 = vpop.f32.mrb[28].mxu0 }
 0x115   :  { %487 = vst [vmem:[#allocation2 + $0x1b8] sm:$0xff] %v418_v27  ;;  %v261_v29 = vadd.f32 %v260_v28, %v743_v36  ;;  %v421_v30 = vpop.f32.mrb[28].mxu1  ;;  %v262_v31 = vpop.f32.mrb[29].mxu0 }
 0x116   :  { %v422_v32 = vadd.f32 %v421_v30, %v745_v37  ;;  %v263_v33 = vadd.f32 %v262_v31, %v747_v38  ;;  %v423_v34 = vpop.f32.mrb[29].mxu1 }
 0x117   :  { %488 = vst [vmem:[#allocation2 + $0x1c0] sm:$0xff] %v261_v29  ;;  %v424_v35 = vadd.f32 %v423_v34, %v749_v39 }
 0x118   :  { %490 = vst [vmem:[#allocation2 + $0x1d0] sm:$0xff] %v422_v32  ;;  %489 = vst [vmem:[#allocation2 + $0x1c8] sm:$0xff] %v263_v33  ;;  %v266_v40 = vpop.f32.mrb[30].mxu0 }
 0x119   :  { %491 = vst [vmem:[#allocation2 + $0x1d8] sm:$0xff] %v424_v35  ;;  %v267_v41 = vadd.f32 %v266_v40, %v743_v36  ;;  %v427_v42 = vpop.f32.mrb[30].mxu1  ;;  %v268_v43 = vpop.f32.mrb[31].mxu0 }
 0x11a   :  { %v428_v44 = vadd.f32 %v427_v42, %v745_v37  ;;  %v269_v45 = vadd.f32 %v268_v43, %v747_v38  ;;  %v429_v46 = vpop.f32.mrb[31].mxu1 }
 0x11b   :  { %492 = vst [vmem:[#allocation2 + $0x1e0] sm:$0xff] %v267_v41  ;;  %v430_v47 = vadd.f32 %v429_v46, %v749_v39 }
 0x11c   :  { %494 = vst [vmem:[#allocation2 + $0x1f0] sm:$0xff] %v428_v44  ;;  %493 = vst [vmem:[#allocation2 + $0x1e8] sm:$0xff] %v269_v45 }
 0x11d   :  { %495 = vst [vmem:[#allocation2 + $0x1f8] sm:$0xff] %v430_v47 }
 0x11e   :  { %567 = shalt.err (!%p564_p4)
}
 0x11f   :  { %s568_s9 = scalar_lea.hbm %s830_s3, 8192 }
 0x120   :  { %p569_p5 = scmp.ne.s32.totalorder %s830_s3, %s568_s9  ;;  %p572_p6 = scmp.lt.u32.totalorder %s568_s9, %s830_s3 }
 0x122   :  { %p574_p7 = pnand %p572_p6, %p569_p5 }
 0x124   :  { %577 = shalt.err (!%p574_p7)
}
 0x125   :  { %s582_s14 = smov 512   ;;  %s583_s15 = smov 32  }
 0x126   :  { %507 = dma.vmem_to_hbm [thread:$0]  %s502_s2, 8192, %s830_s3, [#allocation3], %s582_s14, %s582_s14, %s583_s15  }
 0x127   :  { %578 = dma.done.wait [#allocation3], 8192  }
 0x128   :  { %579 = vsyncadd [#allocation3], 4294959104 }
 0x129   :  { %511 = vsyncpa [#allocation3], 1 }

</bundles_post_ra>
